<compile_context>
chip_gen: v7x
topology: tpu7x:2x2x1
jax: 0.10.0
libtpu: 0.0.40
codegen_flags: <defaults>
</compile_context>

<pallas_src>
import math
import functools

import jax
import jax.numpy as jnp
from jax import lax
from jax.experimental import pallas as pl
from jax.experimental.pallas import tpu as pltpu


def _layernorm(x, w, b, eps=1e-5):
    # x: (rows, C) f32, w/b: (C,)
    mu = jnp.mean(x, axis=-1, keepdims=True)
    var = jnp.mean((x - mu) ** 2, axis=-1, keepdims=True)
    return (x - mu) * lax.rsqrt(var + eps) * w + b


def _gelu(x, use_approx):
    if use_approx:
        return x * jax.nn.sigmoid(1.702 * x)
    # exact erf-based GELU (matches torch F.gelu default)
    return 0.5 * x * (1.0 + lax.erf(x * 0.7071067811865476))


_TRANS_B_DIM_NUMBERS = (((1,), (1,)), ((), ()))  # A @ B^T without materializing B^T


def _row_tile(T, cap=256):
    """Largest sequence row-tile <= cap that divides T (multiple of 8 if possible)."""
    if T <= cap:
        return T
    for t in range(cap, 7, -8):
        if t % 8 == 0 and T % t == 0:
            return t
    return T


def block_kernel(x_ref,
                 ln1w_ref, ln1b_ref, ln2w_ref, ln2b_ref,
                 wqkv_ref, bqkv_ref, wp_ref, bp_ref,
                 w1_ref, b1_ref, w2_ref, b2_ref,
                 o_ref,
                 y_sc,
                 *, n_heads: int, gelu_use_approx: bool,
                 approx_softmax: bool, compute_dtype, row_tile: int):
    x = x_ref[0].astype(jnp.float32)                       # (T, C) f32
    T, C = x.shape
    hd = C // n_heads
    n_tiles = T // row_tile

    # ---- attention branch: ln1 -> fused qkv (bf16) -> causal softmax -> proj ----
    h = _layernorm(x, ln1w_ref[0], ln1b_ref[0]).astype(compute_dtype)

    # One wide MXU pass for Q|K|V; 1/sqrt(hd) is pre-folded into the Q columns.
    # Cast to compute_dtype immediately: only a (T, 3C) bf16 slab stays live.
    qkv = (jnp.dot(h, wqkv_ref[...], preferred_element_type=jnp.float32)
           + bqkv_ref[0]).astype(compute_dtype)            # (T, 3C)
    k = qkv[:, C:2 * C]
    v = qkv[:, 2 * C:]

    col = lax.broadcasted_iota(jnp.int32, (row_tile, T), 1)  # hoisted

    # Row-tiled attention: scores live at (row_tile, T) per head, never (T, T).
    for ti in range(n_tiles):                              # static unroll (small)
        r0 = ti * row_tile
        q_t = qkv[r0:r0 + row_tile, :C]                    # (tq, C), scale folded
        row = lax.broadcasted_iota(jnp.int32, (row_tile, T), 0) + r0
        causal = row >= col
        for hix in range(n_heads):                         # static unroll over heads
            sl = slice(hix * hd, (hix + 1) * hd)
            # q @ k^T via transposed-RHS dot_general (no explicit transpose)
            att = lax.dot_general(q_t[:, sl], k[:, sl], _TRANS_B_DIM_NUMBERS,
                                  preferred_element_type=jnp.float32)
            att = jnp.where(causal, att, -1e30)
            att = att - jnp.max(att, axis=-1, keepdims=True)
            e = jnp.exp(att)
            denom = jnp.sum(e, axis=-1, keepdims=True)
            if approx_softmax:
                p = e * pl.reciprocal(denom, approx=True)  # EUP slot
            else:
                p = e / denom
            yh = jnp.dot(p.astype(compute_dtype), v[:, sl],
                         preferred_element_type=jnp.float32)   # (tq, hd)
            # Write this head's output into its lane slice of the scratch;
            # the projection runs once, full-width, after the loops.
            y_sc[r0:r0 + row_tile, sl] = yh.astype(compute_dtype)

    # Single full-contraction projection: (T, C) @ (C, C) on the MXU.
    attn_out = jnp.dot(y_sc[...], wp_ref[...], preferred_element_type=jnp.float32)

    # TODO(synk): resid_pdrop / attn_pdrop dropout omitted (eval-mode identity).
    x1 = x + attn_out + bp_ref[0]

    # ---- MLP branch, row-tiled: ln2 -> fc1 -> gelu -> fc2 ----
    ln2w = ln2w_ref[0]
    ln2b = ln2b_ref[0]
    for ti in range(n_tiles):
        r0 = ti * row_tile
        x1_t = x1[r0:r0 + row_tile, :]
        h2 = _layernorm(x1_t, ln2w, ln2b).astype(compute_dtype)
        m = jnp.dot(h2, w1_ref[...], preferred_element_type=jnp.float32) + b1_ref[0]
        m = _gelu(m, gelu_use_approx)
        m = jnp.dot(m.astype(compute_dtype), w2_ref[...],
                    preferred_element_type=jnp.float32) + b2_ref[0]
        o_ref[0, r0:r0 + row_tile, :] = (x1_t + m).astype(o_ref.dtype)


def prepare_block_params(params, *, n_heads: int, compute_dtype=jnp.bfloat16):
    """One-time parameter prep: fuse Q|K|V, fold the attention scale, cast weights.

    Do this ONCE (outside the per-step forward) so the concat/cast does not
    re-materialize tens of MiB of weights in HBM every call.
    """
    (ln1w, ln1b, ln2w, ln2b, wq, bq, wk, bk, wv, bv,
     wp, bp, w1, b1, w2, b2) = params
    C = wq.shape[0]
    assert C % n_heads == 0, "embed_dim must be divisible by n_heads"
    hd = C // n_heads
    scale = 1.0 / math.sqrt(hd)
    wqkv = jnp.concatenate([wq * scale, wk, wv], axis=1).astype(compute_dtype)
    bqkv = jnp.concatenate([bq * scale, bk, bv], axis=1).astype(jnp.float32)
    return (
        ln1w.astype(jnp.float32), ln1b.astype(jnp.float32),
        ln2w.astype(jnp.float32), ln2b.astype(jnp.float32),
        wqkv, bqkv,
        wp.astype(compute_dtype), bp.astype(jnp.float32),
        w1.astype(compute_dtype), b1.astype(jnp.float32),
        w2.astype(compute_dtype), b2.astype(jnp.float32),
    )


def block_forward(x, prepared_params, *, n_heads: int,
                  gelu_use_approx: bool = False, compute_dtype=jnp.bfloat16):
    (ln1w, ln1b, ln2w, ln2b, wqkv, bqkv, wp, bp, w1, b1, w2, b2) = prepared_params
    B, T, C = x.shape
    assert C % n_heads == 0, "embed_dim must be divisible by n_heads"
    H = w1.shape[1]
    tq = _row_tile(T)
    low_precision = jnp.dtype(compute_dtype) != jnp.dtype(jnp.float32)

    kernel = functools.partial(
        block_kernel, n_heads=n_heads, gelu_use_approx=gelu_use_approx,
        approx_softmax=low_precision, compute_dtype=compute_dtype, row_tile=tq)

    # ---- VMEM budget: weights (double-buffered blocks) + io tiles + the
    # dominant activation slabs (bf16 qkv, scratch, f32 x/x1/attn_out, per-tile
    # scores/mask, per-tile GELU intermediate). Chip-aware cap with headroom.
    wsz = jnp.dtype(compute_dtype).itemsize
    xsz = jnp.dtype(x.dtype).itemsize
    weight_bytes = (3 * C * C + C * C + C * H + H * C) * wsz
    small_bytes = (4 * C + 3 * C + C + H + C) * 4
    io_bytes = 2 * 2 * T * C * xsz                       # x + out, double-buffered
    act_bytes = (T * 3 * C * wsz                          # qkv (compute_dtype)
                 + T * C * wsz                            # y scratch
                 + 3 * T * C * 4                          # x, x1, attn_out (f32)
                 + 3 * tq * T * 4                         # scores + iota/mask temporaries
                 + tq * H * 4 + tq * H * wsz)             # GELU intermediate
    need = 2 * weight_bytes + 2 * small_bytes + io_bytes + act_bytes
    try:
        cap = int(pltpu.get_tpu_info().vmem_capacity_bytes * 0.8)   # ~51 MiB v7x, ~102 MiB v5e/v6e
    except Exception:
        cap = 48 * 1024 ** 2
    vmem_limit = int(min(max(int(need * 1.5), 32 * 1024 ** 2), cap))

    def wspec(shape):
        zero = lambda b, _n=len(shape): (0,) * _n
        return pl.BlockSpec(shape, zero)

    in_specs = [
        pl.BlockSpec((1, T, C), lambda b: (b, 0, 0)),    # x
        wspec((1, C)), wspec((1, C)),                    # ln1 w, b
        wspec((1, C)), wspec((1, C)),                    # ln2 w, b
        wspec((C, 3 * C)), wspec((1, 3 * C)),            # fused qkv w, b
        wspec((C, C)), wspec((1, C)),                    # proj w, b
        wspec((C, H)), wspec((1, H)),                    # fc1 w, b
        wspec((H, C)), wspec((1, C)),                    # fc2 w, b
    ]

    return pl.pallas_call(
        kernel,
        out_shape=jax.ShapeDtypeStruct((B, T, C), x.dtype),
        grid_spec=pltpu.PrefetchScalarGridSpec(
            num_scalar_prefetch=0,
            grid=(B,),
            in_specs=in_specs,
            out_specs=pl.BlockSpec((1, T, C), lambda b: (b, 0, 0)),
            scratch_shapes=[pltpu.VMEM((T, C), compute_dtype)],
        ),
        compiler_params=pltpu.CompilerParams(
            dimension_semantics=("parallel",),
            vmem_limit_bytes=vmem_limit),
    )(x, ln1w, ln1b, ln2w, ln2b, wqkv, bqkv, wp, bp, w1, b1, w2, b2)


def reference_block(x, params, *, n_heads, gelu_use_approx=False):
    (ln1w, ln1b, ln2w, ln2b, wq, bq, wk, bk, wv, bv,
     wp, bp, w1, b1, w2, b2) = params
    B, T, C = x.shape
    hd = C // n_heads

    def ln(z, w, b):
        mu = jnp.mean(z, -1, keepdims=True)
        var = jnp.mean((z - mu) ** 2, -1, keepdims=True)
        return (z - mu) / jnp.sqrt(var + 1e-5) * w[0] + b[0]

    h = ln(x, ln1w, ln1b)
    q = h @ wq + bq[0]
    k = h @ wk + bk[0]
    v = h @ wv + bv[0]
    q = q.reshape(B, T, n_heads, hd).transpose(0, 2, 1, 3)
    k = k.reshape(B, T, n_heads, hd).transpose(0, 2, 1, 3)
    v = v.reshape(B, T, n_heads, hd).transpose(0, 2, 1, 3)
    att = jnp.einsum("bhqd,bhkd->bhqk", q, k) / math.sqrt(hd)
    mask = jnp.tril(jnp.ones((T, T), bool))
    att = jnp.where(mask, att, -jnp.inf)
    att = jax.nn.softmax(att, axis=-1)
    y = jnp.einsum("bhqk,bhkd->bhqd", att, v)
    y = y.transpose(0, 2, 1, 3).reshape(B, T, C)
    x = x + (y @ wp + bp[0])

    h2 = ln(x, ln2w, ln2b)
    m = h2 @ w1 + b1[0]
    if gelu_use_approx:
        m = m * jax.nn.sigmoid(1.702 * m)
    else:
        m = 0.5 * m * (1.0 + lax.erf(m / jnp.sqrt(2.0)))
    x = x + (m @ w2 + b2[0])
    return x


if __name__ == "__main__":
    B, T, C, n_heads = 2, 8, 32, 4
    H = 4 * C
    key = jax.random.PRNGKey(0)
    keys = jax.random.split(key, 16)

    s = 0.05
    params = (
        jnp.ones((1, C), jnp.float32),                                    # ln1 w
        jax.random.normal(keys[0], (1, C), jnp.float32) * s,              # ln1 b
        jnp.ones((1, C), jnp.float32),                                    # ln2 w
        jax.random.normal(keys[1], (1, C), jnp.float32) * s,              # ln2 b
        jax.random.normal(keys[2], (C, C), jnp.float32) * s,              # wq
        jax.random.normal(keys[3], (1, C), jnp.float32) * s,              # bq
        jax.random.normal(keys[4], (C, C), jnp.float32) * s,              # wk
        jax.random.normal(keys[5], (1, C), jnp.float32) * s,              # bk
        jax.random.normal(keys[6], (C, C), jnp.float32) * s,              # wv
        jax.random.normal(keys[7], (1, C), jnp.float32) * s,              # bv
        jax.random.normal(keys[8], (C, C), jnp.float32) * s,              # wproj
        jax.random.normal(keys[9], (1, C), jnp.float32) * s,              # bproj
        jax.random.normal(keys[10], (C, H), jnp.float32) * s,             # fc1 w
        jax.random.normal(keys[11], (1, H), jnp.float32) * s,             # fc1 b
        jax.random.normal(keys[12], (H, C), jnp.float32) * s,             # fc2 w
        jax.random.normal(keys[13], (1, C), jnp.float32) * s,             # fc2 b
    )

    x = jax.random.normal(keys[14], (B, T, C), jnp.float32)
    ref = reference_block(x, params, n_heads=n_heads, gelu_use_approx=False)

    # f32 compute path: exact semantics, tight tolerance.
    prep_f32 = prepare_block_params(params, n_heads=n_heads, compute_dtype=jnp.float32)
    out_f32 = block_forward(x, prep_f32, n_heads=n_heads, gelu_use_approx=False,
                            compute_dtype=jnp.float32)
    out_f32 = jax.block_until_ready(out_f32)
    assert out_f32.shape == (B, T, C)
    assert jnp.allclose(out_f32, ref, atol=1e-4, rtol=1e-4), \
        f"f32 max err {jnp.max(jnp.abs(out_f32 - ref))}"

    # Default bf16 MXU path (the performance configuration); params prepped ONCE.
    prep_bf16 = prepare_block_params(params, n_heads=n_heads, compute_dtype=jnp.bfloat16)
    out_bf16 = block_forward(x, prep_bf16, n_heads=n_heads, gelu_use_approx=False,
                             compute_dtype=jnp.bfloat16)
    out_bf16 = jax.block_until_ready(out_bf16)
    assert out_bf16.shape == (B, T, C)
    assert jnp.allclose(out_bf16, ref, atol=2e-2, rtol=2e-2), \
        f"bf16 max err {jnp.max(jnp.abs(out_bf16 - ref))}"

    print("KERNEL_OK")
</pallas_src>

<mosaic_0001>
module attributes {stable_mosaic.version = 11 : i64} {
  func.func @block_kernel(%arg0: i32, %arg1: memref<1x8x32xf32, #tpu.memory_space<vmem>>, %arg2: memref<1x32xf32, #tpu.memory_space<vmem>>, %arg3: memref<1x32xf32, #tpu.memory_space<vmem>>, %arg4: memref<1x32xf32, #tpu.memory_space<vmem>>, %arg5: memref<1x32xf32, #tpu.memory_space<vmem>>, %arg6: memref<32x96xf32, #tpu.memory_space<vmem>>, %arg7: memref<1x96xf32, #tpu.memory_space<vmem>>, %arg8: memref<32x32xf32, #tpu.memory_space<vmem>>, %arg9: memref<1x32xf32, #tpu.memory_space<vmem>>, %arg10: memref<32x128xf32, #tpu.memory_space<vmem>>, %arg11: memref<1x128xf32, #tpu.memory_space<vmem>>, %arg12: memref<128x32xf32, #tpu.memory_space<vmem>>, %arg13: memref<1x32xf32, #tpu.memory_space<vmem>>, %arg14: memref<1x8x32xf32, #tpu.memory_space<vmem>>, %arg15: memref<8x32xf32, #tpu.memory_space<vmem>>) attributes {dimension_semantics = [#tpu.dimension_semantics<parallel>], iteration_bounds = array<i64: 2>, scalar_prefetch = 0 : i64, scratch_operands = 1 : i64, tpu.core_type = #tpu.core_type<tc>, window_params = [{transform_indices = @transform_0, window_bounds = array<i64: 1, 8, 32>}, {pipeline_mode = #tpu.pipeline_mode<synchronous>, transform_indices = @transform_1, window_bounds = array<i64: 1, 32>}, {pipeline_mode = #tpu.pipeline_mode<synchronous>, transform_indices = @transform_2, window_bounds = array<i64: 1, 32>}, {pipeline_mode = #tpu.pipeline_mode<synchronous>, transform_indices = @transform_3, window_bounds = array<i64: 1, 32>}, {pipeline_mode = #tpu.pipeline_mode<synchronous>, transform_indices = @transform_4, window_bounds = array<i64: 1, 32>}, {pipeline_mode = #tpu.pipeline_mode<synchronous>, transform_indices = @transform_5, window_bounds = array<i64: 32, 96>}, {pipeline_mode = #tpu.pipeline_mode<synchronous>, transform_indices = @transform_6, window_bounds = array<i64: 1, 96>}, {pipeline_mode = #tpu.pipeline_mode<synchronous>, transform_indices = @transform_7, window_bounds = array<i64: 32, 32>}, {pipeline_mode = #tpu.pipeline_mode<synchronous>, transform_indices = @transform_8, window_bounds = array<i64: 1, 32>}, {pipeline_mode = #tpu.pipeline_mode<synchronous>, transform_indices = @transform_9, window_bounds = array<i64: 32, 128>}, {pipeline_mode = #tpu.pipeline_mode<synchronous>, transform_indices = @transform_10, window_bounds = array<i64: 1, 128>}, {pipeline_mode = #tpu.pipeline_mode<synchronous>, transform_indices = @transform_11, window_bounds = array<i64: 128, 32>}, {pipeline_mode = #tpu.pipeline_mode<synchronous>, transform_indices = @transform_12, window_bounds = array<i64: 1, 32>}, {transform_indices = @transform_13, window_bounds = array<i64: 1, 8, 32>}]} {
    %c0 = arith.constant 0 : index
    %c0_0 = arith.constant 0 : index
    %c0_1 = arith.constant 0 : index
    %0 = vector.load %arg1[%c0, %c0_0, %c0_1] : memref<1x8x32xf32, #tpu.memory_space<vmem>>, vector<1x8x32xf32>
    %1 = vector.shape_cast %0 : vector<1x8x32xf32> to vector<8x32xf32>
    %c0_2 = arith.constant 0 : index
    %c0_3 = arith.constant 0 : index
    %2 = vector.load %arg2[%c0_2, %c0_3] : memref<1x32xf32, #tpu.memory_space<vmem>>, vector<1x32xf32>
    %3 = vector.shape_cast %2 : vector<1x32xf32> to vector<32xf32>
    %c0_4 = arith.constant 0 : index
    %c0_5 = arith.constant 0 : index
    %4 = vector.load %arg3[%c0_4, %c0_5] : memref<1x32xf32, #tpu.memory_space<vmem>>, vector<1x32xf32>
    %5 = vector.shape_cast %4 : vector<1x32xf32> to vector<32xf32>
    %cst = arith.constant dense<0.000000e+00> : vector<8xf32>
    %6 = vector.multi_reduction <add>, %1, %cst [1] : vector<8x32xf32> to vector<8xf32>
    %7 = vector.shape_cast %6 : vector<8xf32> to vector<8x1xf32>
    %cst_6 = arith.constant 3.200000e+01 : f32
    %8 = vector.broadcast %cst_6 : f32 to vector<8x1xf32>
    %9 = arith.divf %7, %8 : vector<8x1xf32>
    %10 = vector.broadcast %9 : vector<8x1xf32> to vector<8x32xf32>
    %11 = arith.subf %1, %10 : vector<8x32xf32>
    %12 = arith.mulf %11, %11 : vector<8x32xf32>
    %cst_7 = arith.constant dense<0.000000e+00> : vector<8xf32>
    %13 = vector.multi_reduction <add>, %12, %cst_7 [1] : vector<8x32xf32> to vector<8xf32>
    %14 = vector.shape_cast %13 : vector<8xf32> to vector<8x1xf32>
    %cst_8 = arith.constant 3.200000e+01 : f32
    %15 = vector.broadcast %cst_8 : f32 to vector<8x1xf32>
    %16 = arith.divf %14, %15 : vector<8x1xf32>
    %17 = vector.broadcast %9 : vector<8x1xf32> to vector<8x32xf32>
    %18 = arith.subf %1, %17 : vector<8x32xf32>
    %cst_9 = arith.constant 9.99999974E-6 : f32
    %19 = vector.broadcast %cst_9 : f32 to vector<8x1xf32>
    %20 = arith.addf %16, %19 : vector<8x1xf32>
    %21 = math.rsqrt %20 : vector<8x1xf32>
    %22 = vector.broadcast %21 : vector<8x1xf32> to vector<8x32xf32>
    %23 = arith.mulf %18, %22 : vector<8x32xf32>
    %24 = vector.shape_cast %3 : vector<32xf32> to vector<1x32xf32>
    %25 = vector.broadcast %24 : vector<1x32xf32> to vector<8x32xf32>
    %26 = arith.mulf %23, %25 : vector<8x32xf32>
    %27 = vector.shape_cast %5 : vector<32xf32> to vector<1x32xf32>
    %28 = vector.broadcast %27 : vector<1x32xf32> to vector<8x32xf32>
    %29 = arith.addf %26, %28 : vector<8x32xf32>
    %c0_10 = arith.constant 0 : index
    %c0_11 = arith.constant 0 : index
    %30 = vector.load %arg6[%c0_10, %c0_11] : memref<32x96xf32, #tpu.memory_space<vmem>>, vector<32x96xf32>
    %cst_12 = arith.constant dense<0.000000e+00> : vector<8x96xf32>
    %31 = tpu.matmul %29, %30, %cst_12 {dimension_numbers = #tpu.dot_dimension_numbers<[1], [0], [0], [1], [0, 0, 1, 1], [], []>} : vector<8x32xf32>, vector<32x96xf32>, vector<8x96xf32> -> vector<8x96xf32>
    %c0_13 = arith.constant 0 : index
    %c0_14 = arith.constant 0 : index
    %32 = vector.load %arg7[%c0_13, %c0_14] : memref<1x96xf32, #tpu.memory_space<vmem>>, vector<1x96xf32>
    %33 = vector.shape_cast %32 : vector<1x96xf32> to vector<96xf32>
    %34 = vector.shape_cast %33 : vector<96xf32> to vector<1x96xf32>
    %35 = vector.broadcast %34 : vector<1x96xf32> to vector<8x96xf32>
    %36 = arith.addf %31, %35 : vector<8x96xf32>
    %37 = vector.extract_strided_slice %36 {offsets = [0, 32], sizes = [8, 32], strides = [1, 1]} : vector<8x96xf32> to vector<8x32xf32>
    %38 = vector.extract_strided_slice %36 {offsets = [0, 64], sizes = [8, 32], strides = [1, 1]} : vector<8x96xf32> to vector<8x32xf32>
    %39 = tpu.iota {dimensions = array<i32: 1>} : vector<8x8xi32>
    %40 = vector.extract_strided_slice %36 {offsets = [0, 0], sizes = [8, 32], strides = [1, 1]} : vector<8x96xf32> to vector<8x32xf32>
    %41 = tpu.iota {dimensions = array<i32: 0>} : vector<8x8xi32>
    %c0_i32 = arith.constant 0 : i32
    %42 = vector.broadcast %c0_i32 : i32 to vector<8x8xi32>
    %43 = arith.addi %41, %42 : vector<8x8xi32>
    %44 = arith.cmpi sge, %43, %39 : vector<8x8xi32>
    %45 = vector.extract_strided_slice %40 {offsets = [0, 0], sizes = [8, 8], strides = [1, 1]} : vector<8x32xf32> to vector<8x8xf32>
    %46 = vector.extract_strided_slice %37 {offsets = [0, 0], sizes = [8, 8], strides = [1, 1]} : vector<8x32xf32> to vector<8x8xf32>
    %cst_15 = arith.constant dense<0.000000e+00> : vector<8x8xf32>
    %47 = tpu.matmul %45, %46, %cst_15 {dimension_numbers = #tpu.dot_dimension_numbers<[1], [1], [0], [0], [0, 0, 1, 0], [], []>} : vector<8x8xf32>, vector<8x8xf32>, vector<8x8xf32> -> vector<8x8xf32>
    %cst_16 = arith.constant -1.000000e+30 : f32
    %48 = vector.broadcast %cst_16 : f32 to vector<8x8xf32>
    %49 = arith.select %44, %47, %48 : vector<8x8xi1>, vector<8x8xf32>
    %cst_17 = arith.constant dense<0xFF800000> : vector<8xf32>
    %50 = vector.multi_reduction <maximumf>, %49, %cst_17 [1] : vector<8x8xf32> to vector<8xf32>
    %51 = vector.shape_cast %50 : vector<8xf32> to vector<8x1xf32>
    %52 = vector.broadcast %51 : vector<8x1xf32> to vector<8x8xf32>
    %53 = arith.subf %49, %52 : vector<8x8xf32>
    %54 = math.exp %53 : vector<8x8xf32>
    %cst_18 = arith.constant dense<0.000000e+00> : vector<8xf32>
    %55 = vector.multi_reduction <add>, %54, %cst_18 [1] : vector<8x8xf32> to vector<8xf32>
    %56 = vector.shape_cast %55 : vector<8xf32> to vector<8x1xf32>
    %57 = vector.broadcast %56 : vector<8x1xf32> to vector<8x8xf32>
    %58 = arith.divf %54, %57 : vector<8x8xf32>
    %59 = vector.extract_strided_slice %38 {offsets = [0, 0], sizes = [8, 8], strides = [1, 1]} : vector<8x32xf32> to vector<8x8xf32>
    %cst_19 = arith.constant dense<0.000000e+00> : vector<8x8xf32>
    %60 = tpu.matmul %58, %59, %cst_19 {dimension_numbers = #tpu.dot_dimension_numbers<[1], [0], [0], [1], [0, 0, 1, 1], [], []>} : vector<8x8xf32>, vector<8x8xf32>, vector<8x8xf32> -> vector<8x8xf32>
    %c0_20 = arith.constant 0 : index
    %c0_21 = arith.constant 0 : index
    %61 = vector.load %arg15[%c0_20, %c0_21] : memref<8x32xf32, #tpu.memory_space<vmem>>, vector<8x8xf32>
    tpu.vector_store %arg15[%c0_20, %c0_21], %60 {strides = array<i32>} : memref<8x32xf32, #tpu.memory_space<vmem>>, vector<8x8xf32>,
    %62 = vector.extract_strided_slice %40 {offsets = [0, 8], sizes = [8, 8], strides = [1, 1]} : vector<8x32xf32> to vector<8x8xf32>
    %63 = vector.extract_strided_slice %37 {offsets = [0, 8], sizes = [8, 8], strides = [1, 1]} : vector<8x32xf32> to vector<8x8xf32>
    %cst_22 = arith.constant dense<0.000000e+00> : vector<8x8xf32>
    %64 = tpu.matmul %62, %63, %cst_22 {dimension_numbers = #tpu.dot_dimension_numbers<[1], [1], [0], [0], [0, 0, 1, 0], [], []>} : vector<8x8xf32>, vector<8x8xf32>, vector<8x8xf32> -> vector<8x8xf32>
    %cst_23 = arith.constant -1.000000e+30 : f32
    %65 = vector.broadcast %cst_23 : f32 to vector<8x8xf32>
    %66 = arith.select %44, %64, %65 : vector<8x8xi1>, vector<8x8xf32>
    %cst_24 = arith.constant dense<0xFF800000> : vector<8xf32>
    %67 = vector.multi_reduction <maximumf>, %66, %cst_24 [1] : vector<8x8xf32> to vector<8xf32>
    %68 = vector.shape_cast %67 : vector<8xf32> to vector<8x1xf32>
    %69 = vector.broadcast %68 : vector<8x1xf32> to vector<8x8xf32>
    %70 = arith.subf %66, %69 : vector<8x8xf32>
    %71 = math.exp %70 : vector<8x8xf32>
    %cst_25 = arith.constant dense<0.000000e+00> : vector<8xf32>
    %72 = vector.multi_reduction <add>, %71, %cst_25 [1] : vector<8x8xf32> to vector<8xf32>
    %73 = vector.shape_cast %72 : vector<8xf32> to vector<8x1xf32>
    %74 = vector.broadcast %73 : vector<8x1xf32> to vector<8x8xf32>
    %75 = arith.divf %71, %74 : vector<8x8xf32>
    %76 = vector.extract_strided_slice %38 {offsets = [0, 8], sizes = [8, 8], strides = [1, 1]} : vector<8x32xf32> to vector<8x8xf32>
    %cst_26 = arith.constant dense<0.000000e+00> : vector<8x8xf32>
    %77 = tpu.matmul %75, %76, %cst_26 {dimension_numbers = #tpu.dot_dimension_numbers<[1], [0], [0], [1], [0, 0, 1, 1], [], []>} : vector<8x8xf32>, vector<8x8xf32>, vector<8x8xf32> -> vector<8x8xf32>
    %c0_27 = arith.constant 0 : index
    %c8 = arith.constant 8 : index
    %78 = vector.load %arg15[%c0_27, %c8] : memref<8x32xf32, #tpu.memory_space<vmem>>, vector<8x8xf32>
    tpu.vector_store %arg15[%c0_27, %c8], %77 {strides = array<i32>} : memref<8x32xf32, #tpu.memory_space<vmem>>, vector<8x8xf32>,
    %79 = vector.extract_strided_slice %40 {offsets = [0, 16], sizes = [8, 8], strides = [1, 1]} : vector<8x32xf32> to vector<8x8xf32>
    %80 = vector.extract_strided_slice %37 {offsets = [0, 16], sizes = [8, 8], strides = [1, 1]} : vector<8x32xf32> to vector<8x8xf32>
    %cst_28 = arith.constant dense<0.000000e+00> : vector<8x8xf32>
    %81 = tpu.matmul %79, %80, %cst_28 {dimension_numbers = #tpu.dot_dimension_numbers<[1], [1], [0], [0], [0, 0, 1, 0], [], []>} : vector<8x8xf32>, vector<8x8xf32>, vector<8x8xf32> -> vector<8x8xf32>
    %cst_29 = arith.constant -1.000000e+30 : f32
    %82 = vector.broadcast %cst_29 : f32 to vector<8x8xf32>
    %83 = arith.select %44, %81, %82 : vector<8x8xi1>, vector<8x8xf32>
    %cst_30 = arith.constant dense<0xFF800000> : vector<8xf32>
    %84 = vector.multi_reduction <maximumf>, %83, %cst_30 [1] : vector<8x8xf32> to vector<8xf32>
    %85 = vector.shape_cast %84 : vector<8xf32> to vector<8x1xf32>
    %86 = vector.broadcast %85 : vector<8x1xf32> to vector<8x8xf32>
    %87 = arith.subf %83, %86 : vector<8x8xf32>
    %88 = math.exp %87 : vector<8x8xf32>
    %cst_31 = arith.constant dense<0.000000e+00> : vector<8xf32>
    %89 = vector.multi_reduction <add>, %88, %cst_31 [1] : vector<8x8xf32> to vector<8xf32>
    %90 = vector.shape_cast %89 : vector<8xf32> to vector<8x1xf32>
    %91 = vector.broadcast %90 : vector<8x1xf32> to vector<8x8xf32>
    %92 = arith.divf %88, %91 : vector<8x8xf32>
    %93 = vector.extract_strided_slice %38 {offsets = [0, 16], sizes = [8, 8], strides = [1, 1]} : vector<8x32xf32> to vector<8x8xf32>
    %cst_32 = arith.constant dense<0.000000e+00> : vector<8x8xf32>
    %94 = tpu.matmul %92, %93, %cst_32 {dimension_numbers = #tpu.dot_dimension_numbers<[1], [0], [0], [1], [0, 0, 1, 1], [], []>} : vector<8x8xf32>, vector<8x8xf32>, vector<8x8xf32> -> vector<8x8xf32>
    %c0_33 = arith.constant 0 : index
    %c16 = arith.constant 16 : index
    %95 = vector.load %arg15[%c0_33, %c16] : memref<8x32xf32, #tpu.memory_space<vmem>>, vector<8x8xf32>
    tpu.vector_store %arg15[%c0_33, %c16], %94 {strides = array<i32>} : memref<8x32xf32, #tpu.memory_space<vmem>>, vector<8x8xf32>,
    %96 = vector.extract_strided_slice %40 {offsets = [0, 24], sizes = [8, 8], strides = [1, 1]} : vector<8x32xf32> to vector<8x8xf32>
    %97 = vector.extract_strided_slice %37 {offsets = [0, 24], sizes = [8, 8], strides = [1, 1]} : vector<8x32xf32> to vector<8x8xf32>
    %cst_34 = arith.constant dense<0.000000e+00> : vector<8x8xf32>
    %98 = tpu.matmul %96, %97, %cst_34 {dimension_numbers = #tpu.dot_dimension_numbers<[1], [1], [0], [0], [0, 0, 1, 0], [], []>} : vector<8x8xf32>, vector<8x8xf32>, vector<8x8xf32> -> vector<8x8xf32>
    %cst_35 = arith.constant -1.000000e+30 : f32
    %99 = vector.broadcast %cst_35 : f32 to vector<8x8xf32>
    %100 = arith.select %44, %98, %99 : vector<8x8xi1>, vector<8x8xf32>
    %cst_36 = arith.constant dense<0xFF800000> : vector<8xf32>
    %101 = vector.multi_reduction <maximumf>, %100, %cst_36 [1] : vector<8x8xf32> to vector<8xf32>
    %102 = vector.shape_cast %101 : vector<8xf32> to vector<8x1xf32>
    %103 = vector.broadcast %102 : vector<8x1xf32> to vector<8x8xf32>
    %104 = arith.subf %100, %103 : vector<8x8xf32>
    %105 = math.exp %104 : vector<8x8xf32>
    %cst_37 = arith.constant dense<0.000000e+00> : vector<8xf32>
    %106 = vector.multi_reduction <add>, %105, %cst_37 [1] : vector<8x8xf32> to vector<8xf32>
    %107 = vector.shape_cast %106 : vector<8xf32> to vector<8x1xf32>
    %108 = vector.broadcast %107 : vector<8x1xf32> to vector<8x8xf32>
    %109 = arith.divf %105, %108 : vector<8x8xf32>
    %110 = vector.extract_strided_slice %38 {offsets = [0, 24], sizes = [8, 8], strides = [1, 1]} : vector<8x32xf32> to vector<8x8xf32>
    %cst_38 = arith.constant dense<0.000000e+00> : vector<8x8xf32>
    %111 = tpu.matmul %109, %110, %cst_38 {dimension_numbers = #tpu.dot_dimension_numbers<[1], [0], [0], [1], [0, 0, 1, 1], [], []>} : vector<8x8xf32>, vector<8x8xf32>, vector<8x8xf32> -> vector<8x8xf32>
    %c0_39 = arith.constant 0 : index
    %c24 = arith.constant 24 : index
    %112 = vector.load %arg15[%c0_39, %c24] : memref<8x32xf32, #tpu.memory_space<vmem>>, vector<8x8xf32>
    tpu.vector_store %arg15[%c0_39, %c24], %111 {strides = array<i32>} : memref<8x32xf32, #tpu.memory_space<vmem>>, vector<8x8xf32>,
    %c0_40 = arith.constant 0 : index
    %c0_41 = arith.constant 0 : index
    %113 = vector.load %arg15[%c0_40, %c0_41] : memref<8x32xf32, #tpu.memory_space<vmem>>, vector<8x32xf32>
    %c0_42 = arith.constant 0 : index
    %c0_43 = arith.constant 0 : index
    %114 = vector.load %arg8[%c0_42, %c0_43] : memref<32x32xf32, #tpu.memory_space<vmem>>, vector<32x32xf32>
    %cst_44 = arith.constant dense<0.000000e+00> : vector<8x32xf32>
    %115 = tpu.matmul %113, %114, %cst_44 {dimension_numbers = #tpu.dot_dimension_numbers<[1], [0], [0], [1], [0, 0, 1, 1], [], []>} : vector<8x32xf32>, vector<32x32xf32>, vector<8x32xf32> -> vector<8x32xf32>
    %116 = arith.addf %1, %115 : vector<8x32xf32>
    %c0_45 = arith.constant 0 : index
    %c0_46 = arith.constant 0 : index
    %117 = vector.load %arg9[%c0_45, %c0_46] : memref<1x32xf32, #tpu.memory_space<vmem>>, vector<1x32xf32>
    %118 = vector.shape_cast %117 : vector<1x32xf32> to vector<32xf32>
    %119 = vector.shape_cast %118 : vector<32xf32> to vector<1x32xf32>
    %120 = vector.broadcast %119 : vector<1x32xf32> to vector<8x32xf32>
    %121 = arith.addf %116, %120 : vector<8x32xf32>
    %c0_47 = arith.constant 0 : index
    %c0_48 = arith.constant 0 : index
    %122 = vector.load %arg4[%c0_47, %c0_48] : memref<1x32xf32, #tpu.memory_space<vmem>>, vector<1x32xf32>
    %123 = vector.shape_cast %122 : vector<1x32xf32> to vector<32xf32>
    %c0_49 = arith.constant 0 : index
    %c0_50 = arith.constant 0 : index
    %124 = vector.load %arg5[%c0_49, %c0_50] : memref<1x32xf32, #tpu.memory_space<vmem>>, vector<1x32xf32>
    %125 = vector.shape_cast %124 : vector<1x32xf32> to vector<32xf32>
    %cst_51 = arith.constant dense<0.000000e+00> : vector<8xf32>
    %126 = vector.multi_reduction <add>, %121, %cst_51 [1] : vector<8x32xf32> to vector<8xf32>
    %127 = vector.shape_cast %126 : vector<8xf32> to vector<8x1xf32>
    %cst_52 = arith.constant 3.200000e+01 : f32
    %128 = vector.broadcast %cst_52 : f32 to vector<8x1xf32>
    %129 = arith.divf %127, %128 : vector<8x1xf32>
    %130 = vector.broadcast %129 : vector<8x1xf32> to vector<8x32xf32>
    %131 = arith.subf %121, %130 : vector<8x32xf32>
    %132 = arith.mulf %131, %131 : vector<8x32xf32>
    %cst_53 = arith.constant dense<0.000000e+00> : vector<8xf32>
    %133 = vector.multi_reduction <add>, %132, %cst_53 [1] : vector<8x32xf32> to vector<8xf32>
    %134 = vector.shape_cast %133 : vector<8xf32> to vector<8x1xf32>
    %cst_54 = arith.constant 3.200000e+01 : f32
    %135 = vector.broadcast %cst_54 : f32 to vector<8x1xf32>
    %136 = arith.divf %134, %135 : vector<8x1xf32>
    %137 = vector.broadcast %129 : vector<8x1xf32> to vector<8x32xf32>
    %138 = arith.subf %121, %137 : vector<8x32xf32>
    %cst_55 = arith.constant 9.99999974E-6 : f32
    %139 = vector.broadcast %cst_55 : f32 to vector<8x1xf32>
    %140 = arith.addf %136, %139 : vector<8x1xf32>
    %141 = math.rsqrt %140 : vector<8x1xf32>
    %142 = vector.broadcast %141 : vector<8x1xf32> to vector<8x32xf32>
    %143 = arith.mulf %138, %142 : vector<8x32xf32>
    %144 = vector.shape_cast %123 : vector<32xf32> to vector<1x32xf32>
    %145 = vector.broadcast %144 : vector<1x32xf32> to vector<8x32xf32>
    %146 = arith.mulf %143, %145 : vector<8x32xf32>
    %147 = vector.shape_cast %125 : vector<32xf32> to vector<1x32xf32>
    %148 = vector.broadcast %147 : vector<1x32xf32> to vector<8x32xf32>
    %149 = arith.addf %146, %148 : vector<8x32xf32>
    %c0_56 = arith.constant 0 : index
    %c0_57 = arith.constant 0 : index
    %150 = vector.load %arg10[%c0_56, %c0_57] : memref<32x128xf32, #tpu.memory_space<vmem>>, vector<32x128xf32>
    %cst_58 = arith.constant dense<0.000000e+00> : vector<8x128xf32>
    %151 = tpu.matmul %149, %150, %cst_58 {dimension_numbers = #tpu.dot_dimension_numbers<[1], [0], [0], [1], [0, 0, 1, 1], [], []>} : vector<8x32xf32>, vector<32x128xf32>, vector<8x128xf32> -> vector<8x128xf32>
    %c0_59 = arith.constant 0 : index
    %c0_60 = arith.constant 0 : index
    %152 = vector.load %arg11[%c0_59, %c0_60] : memref<1x128xf32, #tpu.memory_space<vmem>>, vector<1x128xf32>
    %153 = vector.shape_cast %152 : vector<1x128xf32> to vector<128xf32>
    %154 = vector.shape_cast %153 : vector<128xf32> to vector<1x128xf32>
    %155 = vector.broadcast %154 : vector<1x128xf32> to vector<8x128xf32>
    %156 = arith.addf %151, %155 : vector<8x128xf32>
    %cst_61 = arith.constant 5.000000e-01 : f32
    %157 = vector.broadcast %cst_61 : f32 to vector<8x128xf32>
    %158 = arith.mulf %157, %156 : vector<8x128xf32>
    %cst_62 = arith.constant 0.707106769 : f32
    %159 = vector.broadcast %cst_62 : f32 to vector<8x128xf32>
    %160 = arith.mulf %156, %159 : vector<8x128xf32>
    %161 = math.erf %160 : vector<8x128xf32>
    %cst_63 = arith.constant 1.000000e+00 : f32
    %162 = vector.broadcast %cst_63 : f32 to vector<8x128xf32>
    %163 = arith.addf %162, %161 : vector<8x128xf32>
    %164 = arith.mulf %158, %163 : vector<8x128xf32>
    %c0_64 = arith.constant 0 : index
    %c0_65 = arith.constant 0 : index
    %165 = vector.load %arg12[%c0_64, %c0_65] : memref<128x32xf32, #tpu.memory_space<vmem>>, vector<128x32xf32>
    %cst_66 = arith.constant dense<0.000000e+00> : vector<8x32xf32>
    %166 = tpu.matmul %164, %165, %cst_66 {dimension_numbers = #tpu.dot_dimension_numbers<[1], [0], [0], [1], [0, 0, 1, 1], [], []>} : vector<8x128xf32>, vector<128x32xf32>, vector<8x32xf32> -> vector<8x32xf32>
    %c0_67 = arith.constant 0 : index
    %c0_68 = arith.constant 0 : index
    %167 = vector.load %arg13[%c0_67, %c0_68] : memref<1x32xf32, #tpu.memory_space<vmem>>, vector<1x32xf32>
    %168 = vector.shape_cast %167 : vector<1x32xf32> to vector<32xf32>
    %169 = vector.shape_cast %168 : vector<32xf32> to vector<1x32xf32>
    %170 = vector.broadcast %169 : vector<1x32xf32> to vector<8x32xf32>
    %171 = arith.addf %166, %170 : vector<8x32xf32>
    %172 = arith.addf %121, %171 : vector<8x32xf32>
    %c0_69 = arith.constant 0 : index
    %c0_70 = arith.constant 0 : index
    %c0_71 = arith.constant 0 : index
    %173 = vector.load %arg14[%c0_69, %c0_70, %c0_71] : memref<1x8x32xf32, #tpu.memory_space<vmem>>, vector<1x8x32xf32>
    %174 = vector.shape_cast %173 : vector<1x8x32xf32> to vector<8x32xf32>
    %175 = vector.shape_cast %172 : vector<8x32xf32> to vector<1x8x32xf32>
    tpu.vector_store %arg14[%c0_69, %c0_70, %c0_71], %175 {strides = array<i32>} : memref<1x8x32xf32, #tpu.memory_space<vmem>>, vector<1x8x32xf32>,
    return
  }
  func.func @transform_0(%arg0: i32) -> (i32, i32, i32) {
    %c0_i32 = arith.constant 0 : i32
    %c0_i32_0 = arith.constant 0 : i32
    %c0_i32_1 = arith.constant 0 : i32
    return %arg0, %c0_i32, %c0_i32_0 : i32, i32, i32
  }
  func.func @transform_1(%arg0: i32) -> (i32, i32) {
    %c0_i32 = arith.constant 0 : i32
    %c0_i32_0 = arith.constant 0 : i32
    %c0_i32_1 = arith.constant 0 : i32
    return %c0_i32, %c0_i32_0 : i32, i32
  }
  func.func @transform_2(%arg0: i32) -> (i32, i32) {
    %c0_i32 = arith.constant 0 : i32
    %c0_i32_0 = arith.constant 0 : i32
    %c0_i32_1 = arith.constant 0 : i32
    return %c0_i32, %c0_i32_0 : i32, i32
  }
  func.func @transform_3(%arg0: i32) -> (i32, i32) {
    %c0_i32 = arith.constant 0 : i32
    %c0_i32_0 = arith.constant 0 : i32
    %c0_i32_1 = arith.constant 0 : i32
    return %c0_i32, %c0_i32_0 : i32, i32
  }
  func.func @transform_4(%arg0: i32) -> (i32, i32) {
    %c0_i32 = arith.constant 0 : i32
    %c0_i32_0 = arith.constant 0 : i32
    %c0_i32_1 = arith.constant 0 : i32
    return %c0_i32, %c0_i32_0 : i32, i32
  }
  func.func @transform_5(%arg0: i32) -> (i32, i32) {
    %c0_i32 = arith.constant 0 : i32
    %c0_i32_0 = arith.constant 0 : i32
    %c0_i32_1 = arith.constant 0 : i32
    return %c0_i32, %c0_i32_0 : i32, i32
  }
  func.func @transform_6(%arg0: i32) -> (i32, i32) {
    %c0_i32 = arith.constant 0 : i32
    %c0_i32_0 = arith.constant 0 : i32
    %c0_i32_1 = arith.constant 0 : i32
    return %c0_i32, %c0_i32_0 : i32, i32
  }
  func.func @transform_7(%arg0: i32) -> (i32, i32) {
    %c0_i32 = arith.constant 0 : i32
    %c0_i32_0 = arith.constant 0 : i32
    %c0_i32_1 = arith.constant 0 : i32
    return %c0_i32, %c0_i32_0 : i32, i32
  }
  func.func @transform_8(%arg0: i32) -> (i32, i32) {
    %c0_i32 = arith.constant 0 : i32
    %c0_i32_0 = arith.constant 0 : i32
    %c0_i32_1 = arith.constant 0 : i32
    return %c0_i32, %c0_i32_0 : i32, i32
  }
  func.func @transform_9(%arg0: i32) -> (i32, i32) {
    %c0_i32 = arith.constant 0 : i32
    %c0_i32_0 = arith.constant 0 : i32
    %c0_i32_1 = arith.constant 0 : i32
    return %c0_i32, %c0_i32_0 : i32, i32
  }
  func.func @transform_10(%arg0: i32) -> (i32, i32) {
    %c0_i32 = arith.constant 0 : i32
    %c0_i32_0 = arith.constant 0 : i32
    %c0_i32_1 = arith.constant 0 : i32
    return %c0_i32, %c0_i32_0 : i32, i32
  }
  func.func @transform_11(%arg0: i32) -> (i32, i32) {
    %c0_i32 = arith.constant 0 : i32
    %c0_i32_0 = arith.constant 0 : i32
    %c0_i32_1 = arith.constant 0 : i32
    return %c0_i32, %c0_i32_0 : i32, i32
  }
  func.func @transform_12(%arg0: i32) -> (i32, i32) {
    %c0_i32 = arith.constant 0 : i32
    %c0_i32_0 = arith.constant 0 : i32
    %c0_i32_1 = arith.constant 0 : i32
    return %c0_i32, %c0_i32_0 : i32, i32
  }
  func.func @transform_13(%arg0: i32) -> (i32, i32, i32) {
    %c0_i32 = arith.constant 0 : i32
    %c0_i32_0 = arith.constant 0 : i32
    %c0_i32_1 = arith.constant 0 : i32
    return %arg0, %c0_i32, %c0_i32_0 : i32, i32, i32
  }
}

</mosaic_0001>

<bundles_post_ra>
// kernel: tpu_custom_call.1
= control target key start
LH: loop header
LB: loop body
LE: loop exit
PB: predicated region body
PF: predicated region fallthrough
CT: control target
= control target key end

     0   :  { %s2385_s0 = inlined_call_operand.vmem [shape: f32[2,8,32], index: 0, kind: input, shape index: {}]   ;;  %s2386_s1 = inlined_call_operand.vmem [shape: f32[1,32], index: 1, kind: input, shape index: {}]   ;;  %s2387_s2 = inlined_call_operand.vmem [shape: f32[1,32], index: 2, kind: input, shape index: {}]   ;;  %s2388_s3 = inlined_call_operand.vmem [shape: f32[1,32], index: 3, kind: input, shape index: {}]   ;;  %s2389_s4 = inlined_call_operand.vmem [shape: f32[1,32], index: 4, kind: input, shape index: {}]   ;;  %s2390_s5 = inlined_call_operand.vmem [shape: f32[32,96], index: 5, kind: input, shape index: {}]   ;;  %s2391_s6 = inlined_call_operand.vmem [shape: f32[1,96], index: 6, kind: input, shape index: {}]   ;;  %s2392_s7 = inlined_call_operand.vmem [shape: f32[32,32], index: 7, kind: input, shape index: {}]   ;;  %s2393_s8 = inlined_call_operand.vmem [shape: f32[1,32], index: 8, kind: input, shape index: {}]   ;;  %s2394_s9 = inlined_call_operand.vmem [shape: f32[32,128], index: 9, kind: input, shape index: {}]   ;;  %s2395_s10 = inlined_call_operand.vmem [shape: f32[1,128], index: 10, kind: input, shape index: {}]   ;;  %s2396_s11 = inlined_call_operand.vmem [shape: f32[128,32], index: 11, kind: input, shape index: {}]   ;;  %s2397_s12 = inlined_call_operand.vmem [shape: f32[1,32], index: 12, kind: input, shape index: {}]   ;;  %s2398_s13 = inlined_call_operand.hbm [shape: f32[2,8,32], index: 13, kind: output, shape index: {}]  }
   0x1   :  { %2399 = sst [smem:[#allocation6_spill]] %s2385_s0 }
   0x2   :  { %2400 = sst [smem:[#allocation7_spill]] %s2386_s1 }
   0x3   :  { %2401 = sst [smem:[#allocation8_spill]] %s2387_s2 }
   0x4   :  { %18 = vsyncpa [#allocation4], 0 }
   0x5   :  { %20 = vsyncpa [#allocation4 + $0x1], 0  ;;  %s2074_s25 = smov 0   ;;  %s2076_s26 = smov 0  }
   0x6   :  { %s2078_s27 = smov 0   ;;  %s2080_s28 = smov 0  }
   0x7 LB: > { %s2095_s29 = sadd.s32 4294967295, %s1984_s28   ;;  %s1613_s30 = sadd.s32 4294967294, %s1984_s28   ;;  %s1984_s28 = sphi %s2080_s28, %s2410_s28   ;;  %s1980_s27 = sphi %s2078_s27, %s2409_s27   ;;  %s1976_s26 = sphi %s2076_s26, %s2408_s26   ;;  %s1972_s25 = sphi %s2074_s25, %s2407_s25  }
   0x8   : > { %s2099_s14 = sadd.s32 1, %s1984_s28   ;;  %s311_s15 = sadd.s32 1, %s1980_s27 }
   0x9   : > { %s308_s16 = ssub.s32 %s1984_s28, %s2099_s14  ;;  %p321_p0 = scmp.ne.s32.totalorder %s1980_s27, %s1976_s26 }
   0xa   : > { %p309_p1 = scmp.eq.s32.totalorder %s308_s16, 0  ;;  %p322_p2 = scmp.eq.s32.totalorder %s2095_s29, 1 }
   0xb   : > { %p327_p3 = scmp.ne.s32.totalorder %s1976_s26, %s1972_s25  ;;  %p328_p4 = scmp.eq.s32.totalorder %s1613_s30, 1 }
   0xc   : > { %s2110_s17 = scalar_select %p309_p1, %s1980_s27, %s311_s15  }
   0xd   : > { %p2112_p5 = por %p322_p2, %p321_p0  ;;  %p2116_p6 = por %p328_p4, %p327_p3 }
   0xe   : > { %p1616_p7 = scmp.ge.s32.totalorder %s1984_s28, 1  ;;  %p389_p8 = scmp.lt.s32.totalorder %s1984_s28, 3 }
  0x10   : > { %p390_p9 = pnand %p1616_p7, %p389_p8 }
  0x11   : > { %p432_p10 = scmp.lt.s32.totalorder (!%p390_p9), %s2095_s29, 1  ;;  %vm439_vm0 = vcmask (!%p390_p9), 261120   ;;  %s2404_s0 = sld [smem:[#allocation6_spill]] (!%p390_p9)  ;;  %v468_v7 = vld [vmem:[%s2390_s5] sm:$0xff] (!%p390_p9)  ;;  %v469_v8 = vld [vmem:[%s2390_s5 + $0x8] sm:$0xff] (!%p390_p9)  ;;  %v470_v9 = vld [vmem:[%s2390_s5 + $0x10] sm:$0xff] (!%p390_p9)  ;;  %v552_v35 = vlaneseq (!%p390_p9) }
  0x12   : > { %393 = sbr.rel (%p390_p9) target bundleno = 2544 (0x9f0), region = 72  ;;  %v1986_v10 = vmov (!%p390_p9), 0.0|0.0   ;;  %v1803_v11 = vpack.c.bf16 (!%p390_p9), %v469_v8, %v468_v7  ;;  %v471_v12 = vld [vmem:[%s2390_s5 + $0x18] sm:$0xff] (!%p390_p9)  ;;  %vm1987_vm1 = vmmov (!%p390_p9), 0   ;;  %v1988_v13 = vmov (!%p390_p9), 0.0   ;;  %s2405_s1 = sld [smem:[#allocation7_spill]] (!%p390_p9) }
  0x13   : > { %1802 = vmatprep.subr.bf16.mxu1 (!%p390_p9), %v1986_v10  ;;  %1702 = vmatprep.mubr.msk.f32.mxu1 (!%p390_p9), %vm1987_vm1, %v1988_v13  ;;  %v1806_v14 = vpack.c.bf16 (!%p390_p9), %v471_v12, %v470_v9  ;;  %s2406_s2 = sld [smem:[#allocation8_spill]] (!%p390_p9)  ;;  %v1621_v24 = vld [vmem:[%s2391_s6] ss:$0 sm:$0xff] (!%p390_p9)  ;;  %s1989_s23 = smov (!%p390_p9), 120   ;;  %vm560_vm2 = vcmask (!%p390_p9), 64512   ;;  %v553_v36 = vand.u32 (!%p390_p9), 127, %v552_v35 }
  0x14   : > { %1715 = vmatprep.subr.mxu0 (!%p390_p9), %v1988_v13  ;;  %1717 = vmatprep.mubr.msk.f32.mxu0 (!%p390_p9), %vm1987_vm1, %v1988_v13  ;;  %s1991_s30 = smov (!%p390_p9), 88   ;;  %s1992_s15 = smov (!%p390_p9), 80   ;;  %v555_v37 = vshrl.u32 (!%p390_p9), %v552_v35, 7  ;;  %v1244_v35 = vld [vmem:[%s2392_s7 + $0x18] sm:$0xff] (!%p390_p9)  ;;  %vm894_vm4 = vcmask (!%p390_p9), 130112   ;;  %vm1066_vm5 = vcmask (!%p390_p9), 195712  }
  0x15   : > { %1804 = vmatpush3.bf16.msra.mxu1 (!%p390_p9), %v1803_v11  ;;  %s1993_s16 = smov (!%p390_p9), 112   ;;  %s1996_s22 = smov (!%p390_p9), 64   ;;  %vm1238_vm6 = vcmask (!%p390_p9), 261312  }
  0x16   : > { %1805 = vmatprep.subr.bf16.mxu1 (!%p390_p9), %v1986_v10  ;;  %vm556_vm3 = vcmp.ge.s32.totalorder (!%p390_p9), %v555_v37, %v553_v36 }
  0x18   : > { %v1619_v19 = vld [vmem:[%s2405_s1] ss:$0 sm:$0xff] (!%p390_p9) }
  0x19   : > { %s433_s20 = scalar_select %p432_p10, %s2095_s29, 1  ;;  %1807 = vmatpush3.bf16.msra.mxu1 %v1806_v14  ;;  %v1620_v21 = vld [vmem:[%s2406_s2] ss:$0 sm:$0xff] }
  0x1a   : > { %1705 = vmatprep.subr.mxu1 %v1988_v13 }
  0x1b   : > { %s1618_s21 = sshll.u32 %s433_s20, 3  ;;  %s1994_s20 = smov 72  }
  0x1c   : > { %s435_s24 = scalar_lea.vmem %s2404_s0, %s1618_s21  ;;  %s1995_s21 = smov 104  }
  0x1d   : > { %v2127_v0 = vld [vmem:[%s435_s24] sm:$0xff]  ;;  %s1990_s24 = smov 96   ;;  %s1643_s0 = sshll.u32 %s2095_s29, 7 }
  0x1e   : > { %v440_v1 = vsel %vm439_vm0, %v2127_v0, 0.0 }
  0x1f   : > { %441 = vadd.xlane.f32.xlu0 %v440_v1 }
  0xac   : > { %v442_v2 = vpop.xlane.xlu0 %441 }
  0xad   : > { %v444_v3 = vmul.f32 0.03125, %v442_v2 }
  0xaf   : > { %v445_v4 = vsub.f32 %v2127_v0, %v444_v3 }
  0xb1   : > { %v446_v5 = vmul.f32 %v445_v4, %v445_v4 }
  0xb3   : > { %v447_v6 = vsel %vm439_vm0, %v446_v5, 0.0 }
  0xb4   : > { %448 = vadd.xlane.f32.xlu0 %v447_v6 }
 0x141   : > { %v449_v15 = vpop.xlane.xlu0 %448 }
 0x142   : > { %v450_v16 = vmul.f32 0.03125, %v449_v15 }
 0x144   : > { %v451_v17 = vadd.f32 1e-05, %v450_v16 }
 0x146   : > { %1900 = vrsqrt.f32 %v451_v17 }
 0x150   : > { %v1901_v18 = vpop.eup %1900 }
 0x151   : > { %v453_v20 = vmul.f32 %v1901_v18, %v445_v4 }
 0x153   : > { %v460_v22 = vmul.f32 %v1619_v19, %v453_v20 }
 0x155   : > { %v467_v23 = vadd.f32 %v1620_v21, %v460_v22 }
 0x157   : > { %1703 = vmatmul.mubr.msk.f32.vlgmr.msra.gmra.mrb[0].mxu1 %vm439_vm0, %v467_v23 }
 0x158   : > { %1707 = vmatprep.mubr.msk.f32.mxu1 %vm1987_vm1, %v1988_v13 }
 0x22a   : > { %v548_v25 = vpop.f32.mrb[0].mxu1 }
 0x22b   : > { %v2165_v26 = vadd.f32 %v1621_v24, %v548_v25  ;;  %v1704_v27 = vpop.f32.mrb[1].mxu1 }
 0x22d   : > { %724 = vrot.lane.b32.xlu0 %v2165_v26, %s1989_s23  ;;  %558 = vrot.lane.b32.xlu1 %v2165_v26, %s1990_s24  ;;  %s1997_s23 = smov 48   ;;  %s1998_s24 = smov 40  }
 0x231   : > { %726 = vrot.lane.b32.xlu1 %v2165_v26, %s1991_s30  ;;  %s1999_s30 = smov 56  }
 0x235   : > { %898 = vrot.lane.b32.xlu1 %v2165_v26, %s1992_s15  ;;  %s2000_s15 = smov 8  }
 0x239   : > { %896 = vrot.lane.b32.xlu1 %v2165_v26, %s1993_s16  ;;  %s2001_s16 = smov 16  }
 0x23d   : > { %1070 = vrot.lane.b32.xlu1 %v2165_v26, %s1994_s20  ;;  %s2002_s20 = smov 24  }
 0x241   : > { %1068 = vrot.lane.b32.xlu1 %v2165_v26, %s1995_s21  ;;  %s429_s21 = sand.u32 1, %s1976_s26  }
 0x29f   : > { %v559_v28 = vpop.permute.xlu1 %558  ;;  %v725_v30 = vpop.permute.xlu0 %724 }
 0x2a0   : > { %1706 = vmatpush3.xpose.msk.msra.mxu1 %vm560_vm2, %v559_v28 }
 0x2a1   : > { %1710 = vmatprep.subr.mxu1 %v1988_v13 }
 0x2a3   : > { %1708 = vmatmul.mubr.msk.f32.vlgmr.msra.gmra.mrb[2].mxu1 %vm560_vm2, %v2165_v26  ;;  %v727_v29 = vpop.permute.xlu1 %726 }
 0x2a4   : > { %1716 = vmatpush3.xpose.msk.msra.mxu0 %vm560_vm2, %v727_v29  ;;  %1712 = vmatprep.mubr.msk.f32.mxu1 %vm1987_vm1, %v1988_v13 }
 0x2a5   : > { %1725 = vmatprep.subr.mxu0 %v1988_v13 }
 0x2a7   : > { %1718 = vmatmul.mubr.msk.f32.vlgmr.msra.gmra.mrb[0].mxu0 %vm560_vm2, %v725_v30  ;;  %v899_v31 = vpop.permute.xlu1 %898 }
 0x2a8   : > { %1726 = vmatpush3.xpose.msk.msra.mxu0 %vm560_vm2, %v899_v31  ;;  %1727 = vmatprep.mubr.msk.f32.mxu0 %vm1987_vm1, %v1988_v13  ;;  %v1241_v31 = vld [vmem:[%s2392_s7] sm:$0xff] }
 0x2a9   : > { %1735 = vmatprep.subr.mxu0 %v1988_v13 }
 0x2ab   : > { %v897_v32 = vpop.permute.xlu1 %896 }
 0x2ac   : > { %1728 = vmatmul.mubr.msk.f32.vlgmr.msra.gmra.mrb[2].mxu0 %vm560_vm2, %v897_v32  ;;  %v1242_v32 = vld [vmem:[%s2392_s7 + $0x8] sm:$0xff] }
 0x2ad   : > { %1737 = vmatprep.mubr.msk.f32.mxu0 %vm1987_vm1, %v1988_v13 }
 0x2af   : > { %v1071_v33 = vpop.permute.xlu1 %1070 }
 0x2b0   : > { %1736 = vmatpush3.xpose.msk.msra.mxu0 %vm560_vm2, %v1071_v33  ;;  %v1809_v33 = vpack.c.bf16 %v1242_v32, %v1241_v31  ;;  %v1459_v31 = vld [vmem:[%s2396_s11 + $0x70] sm:$0xff]  ;;  %v1460_v32 = vld [vmem:[%s2396_s11 + $0x78] sm:$0xff] }
 0x2b1   : > { %1820 = vmatprep.subr.bf16.mxu0 %v1986_v10 }
 0x2b3   : > { %v1069_v34 = vpop.permute.xlu1 %1068 }
 0x2b4   : > { %1738 = vmatmul.mubr.msk.f32.vlgmr.msra.gmra.mrb[4].mxu0 %vm560_vm2, %v1069_v34  ;;  %v1243_v34 = vld [vmem:[%s2392_s7 + $0x10] sm:$0xff] }
 0x2b5   : > { %1799 = vmatprep.mubr.msk.f32.mxu0 %vm1987_vm1, %v1988_v13  ;;  %v1812_v36 = vpack.c.bf16 %v1244_v35, %v1243_v34  ;;  %v1639_v34 = vld [vmem:[%s2395_s10] ss:$0 sm:$0xff] }
 0x376   : > { %v631_v38 = vpop.f32.mrb[2].mxu1 }
 0x377   : > { %v635_v39 = vsel %vm556_vm3, %v631_v38, -1e+30  ;;  %v1709_v40 = vpop.f32.mrb[3].mxu1 }
 0x378   : > { %v636_v41 = vsel %vm560_vm2, %v635_v39, -inf }
 0x379   : > { %637 = vmax.xlane.f32.xlu1 %v636_v41 }
 0x37a   : > { %v798_v42 = vpop.f32.mrb[0].mxu0 }
 0x37b   : > { %v802_v43 = vsel %vm556_vm3, %v798_v42, -1e+30  ;;  %v1719_v44 = vpop.f32.mrb[1].mxu0 }
 0x37c   : > { %v803_v45 = vsel %vm560_vm2, %v802_v43, -inf }
 0x37d   : > { %804 = vmax.xlane.f32.xlu0 %v803_v45 }
 0x37f   : > { %v970_v46 = vpop.f32.mrb[2].mxu0 }
 0x380   : > { %v974_v47 = vsel %vm556_vm3, %v970_v46, -1e+30  ;;  %v1729_v48 = vpop.f32.mrb[3].mxu0 }
 0x381   : > { %v975_v49 = vsel %vm560_vm2, %v974_v47, -inf  ;;  %v1636_v48 = vld [vmem:[%s2393_s8] ss:$0 sm:$0xff] }
 0x382   : > { %976 = vmax.xlane.f32.xlu1 %v975_v49 }
 0x387   : > { %v1142_v50 = vpop.f32.mrb[4].mxu0 }
 0x388   : > { %v1146_v51 = vsel %vm556_vm3, %v1142_v50, -1e+30  ;;  %v1739_v52 = vpop.f32.mrb[5].mxu0 }
 0x389   : > { %v1147_v53 = vsel %vm560_vm2, %v1146_v51, -inf }
 0x38a   : > { %1148 = vmax.xlane.f32.xlu0 %v1147_v53 }
 0x393   : > { %647 = vrot.lane.b32.xlu1 %v2165_v26, %s1996_s22  ;;  %s1617_s22 = sshll.u32 %s429_s21, 3 }
 0x394   : > { %s431_s1 = scalar_lea.vmem [#allocation3], %s1617_s22  ;;  %s2003_s22 = smov [#allocation3]  }
 0x406   : > { %v638_v54 = vpop.xlane.xlu1 %637 }
 0x407   : > { %v639_v55 = vsub.f32 %v635_v39, %v638_v54 }
 0x409   : > { %v640_v56 = vmul.f32 1.442695, %v639_v55 }
 0x40a   : > { %v805_v57 = vpop.xlane.xlu0 %804 }
 0x40b   : > { %1902 = vpow2.f32 %v640_v56  ;;  %v806_v58 = vsub.f32 %v802_v43, %v805_v57  ;;  %v1356_v57 = vld [vmem:[%s2394_s9] sm:$0xff] }
 0x40d   : > { %v807_v59 = vmul.f32 1.442695, %v806_v58 }
 0x40f   : > { %1904 = vpow2.f32 %v807_v59  ;;  %v977_v60 = vpop.xlane.xlu1 %976  ;;  %v1358_v59 = vld [vmem:[%s2394_s9 + $0x10] sm:$0xff] }
 0x410   : > { %v978_v61 = vsub.f32 %v974_v47, %v977_v60  ;;  %v1359_v60 = vld [vmem:[%s2394_s9 + $0x18] sm:$0xff] }
 0x412   : > { %v979_v62 = vmul.f32 1.442695, %v978_v61  ;;  %v1818_v61 = vpack.c.bf16 %v1359_v60, %v1358_v59 }
 0x413   : > { %v648_v63 = vpop.permute.xlu1 %647 }
 0x414   : > { %1906 = vpow2.f32 %v979_v62  ;;  %1711 = vmatpush3.msra.mxu1 %v648_v63  ;;  %v1445_v62 = vld [vmem:[%s2396_s11] sm:$0xff]  ;;  %v1446_v63 = vld [vmem:[%s2396_s11 + $0x8] sm:$0xff] }
 0x415   : > { %v1903_v1 = vpop.eup %1902  ;;  %1720 = vmatprep.subr.mxu1 %v1988_v13 }
 0x416   : > { %v642_v2 = vsel %vm560_vm2, %v1903_v1, 0.0 }
 0x417   : > { %v1149_v3 = vpop.xlane.xlu0 %1148  ;;  %643 = vadd.xlane.f32.xlu1 %v642_v2  ;;  %v1821_v2 = vpack.c.bf16 %v1446_v63, %v1445_v62 }
 0x418   : > { %v1150_v4 = vsub.f32 %v1146_v51, %v1149_v3  ;;  %v1448_v3 = vld [vmem:[%s2396_s11 + $0x18] sm:$0xff] }
 0x419   : > { %v1905_v5 = vpop.eup %1904  ;;  %1822 = vmatpush3.bf16.msra.mxu0 %v1821_v2 }
 0x41a   : > { %v1151_v6 = vmul.f32 1.442695, %v1150_v4  ;;  %v809_v7 = vsel %vm560_vm2, %v1905_v5, 0.0  ;;  %1823 = vmatprep.subr.bf16.mxu0 %v1986_v10 }
 0x41b   : > { %810 = vadd.xlane.f32.xlu0 %v809_v7 }
 0x41c   : > { %1908 = vpow2.f32 %v1151_v6  ;;  %v1450_v6 = vld [vmem:[%s2396_s11 + $0x28] sm:$0xff] }
 0x41e   : > { %v1907_v8 = vpop.eup %1906 }
 0x41f   : > { %v981_v9 = vsel %vm560_vm2, %v1907_v8, 0.0 }
 0x420   : > { %982 = vadd.xlane.f32.xlu1 %v981_v9 }
 0x426   : > { %v1909_v11 = vpop.eup %1908 }
 0x427   : > { %v1153_v12 = vsel %vm560_vm2, %v1909_v11, 0.0 }
 0x428   : > { %1154 = vadd.xlane.f32.xlu0 %v1153_v12 }
 0x431   : > { %986 = vrot.lane.b32.xlu1 %v2165_v26, %s1997_s23  ;;  %s1541_s23 = scalar_lea.sflag [#allocation4], %s429_s21 }
 0x435   : > { %1158 = vrot.lane.b32.xlu1 %v2165_v26, %s1998_s24  ;;  %s1926_s24 = sshll.u32 %s2003_s22, 4  ;;  %s1927_s24 = int_to_ptr.vmem [resolvable:$false] %s1926_s24 }
 0x436   : > { %s1928_s2 = scalar_lea.vmem %s1927_s24, 256 }
 0x43e   : > { %814 = vrot.lane.b32.xlu0 %v2165_v26, %s1999_s30  ;;  %s1554_s30 = sshll.u32 %s431_s1, 4  ;;  %s2344_s30 = int_to_ptr.vmem [resolvable:$true] %s1554_s30 }
 0x43f   : > { %s1922_s29 = scalar_lea.vmem %s2344_s30, 128  ;;  %p1929_p0 = scmp.lt.s32.totalorder %s2344_s30, %s1927_s24 }
 0x440   : > { %p1923_p11 = scmp.ne.s32.totalorder %s2344_s30, %s1922_s29  ;;  %p1930_p1 = scmp.lt.s32.totalorder %s1928_s2, %s1922_s29 }
 0x442   : > { %p1924_p12 = pnand %p1923_p11, %p2112_p5  ;;  %p1931_p2 = por %p1930_p1, %p1929_p0 }
 0x444   : > { %p1925_p13 = pneg %p1924_p12 }
 0x446   : > { %p1932_p3 = pnand %p1931_p2, %p1925_p13 }
 0x4a4   : > { %v644_v14 = vpop.xlane.xlu1 %643 }
 0x4a5   : > { %1910 = vrcp.f32 %v644_v14  ;;  %v1637_v14 = vld [vmem:[%s2388_s3] ss:$0 sm:$0xff] }
 0x4a8   : > { %v811_v15 = vpop.xlane.xlu0 %810 }
 0x4a9   : > { %1912 = vrcp.f32 %v811_v15 }
 0x4ad   : > { %v983_v16 = vpop.xlane.xlu1 %982 }
 0x4ae   : > { %1914 = vrcp.f32 %v983_v16  ;;  %v1638_v16 = vld [vmem:[%s2389_s4] ss:$0 sm:$0xff] }
 0x4af   : > { %v1911_v17 = vpop.eup %1910 }
 0x4b0   : > { %v646_v18 = vmul.f32 %v1911_v17, %v1903_v1  ;;  %v1447_v1 = vld [vmem:[%s2396_s11 + $0x10] sm:$0xff] }
 0x4b1   : > { %v987_v22 = vpop.permute.xlu1 %986  ;;  %v1824_v4 = vpack.c.bf16 %v1448_v3, %v1447_v1 }
 0x4b2   : > { %1713 = vmatmul.mubr.msk.f32.vlgmr.msra.gmra.mrb[4].mxu1 %vm560_vm2, %v646_v18 }
 0x4b3   : > { %1722 = vmatprep.mubr.msk.f32.mxu1 %vm1987_vm1, %v1988_v13  ;;  %v1913_v20 = vpop.eup %1912  ;;  %1825 = vmatpush3.bf16.msra.mxu0 %v1824_v4 }
 0x4b4   : > { %v813_v21 = vmul.f32 %v1913_v20, %v1905_v5  ;;  %v1449_v5 = vld [vmem:[%s2396_s11 + $0x20] sm:$0xff]  ;;  %1826 = vmatprep.subr.bf16.mxu0 %v1986_v10  ;;  %v1452_v20 = vld [vmem:[%s2396_s11 + $0x38] sm:$0xff] }
 0x4b5   : > { %v1155_v19 = vpop.xlane.xlu0 %1154  ;;  %v1159_v26 = vpop.permute.xlu1 %1158  ;;  %v1827_v7 = vpack.c.bf16 %v1450_v6, %v1449_v5 }
 0x4b6   : > { %1916 = vrcp.f32 %v1155_v19  ;;  %v1451_v19 = vld [vmem:[%s2396_s11 + $0x30] sm:$0xff] }
 0x4b7   : > { %1828 = vmatpush3.bf16.msra.mxu0 %v1827_v7 }
 0x4b8   : > { %v1915_v24 = vpop.eup %1914  ;;  %1829 = vmatprep.subr.bf16.mxu0 %v1986_v10 }
 0x4b9   : > { %v815_v23 = vpop.permute.xlu0 %814  ;;  %v985_v25 = vmul.f32 %v1915_v24, %v1907_v8 }
 0x4ba   : > { %1721 = vmatpush3.msra.mxu1 %v815_v23  ;;  %v1454_v23 = vld [vmem:[%s2396_s11 + $0x48] sm:$0xff] }
 0x4bb   : > { %1723 = vmatmul.mubr.msk.f32.vlgmr.msra.gmra.mrb[6].mxu1 %vm560_vm2, %v813_v21  ;;  %1730 = vmatprep.subr.mxu1 %v1988_v13  ;;  %v1830_v21 = vpack.c.bf16 %v1452_v20, %v1451_v19 }
 0x4bc   : > { %1731 = vmatpush3.msra.mxu1 %v987_v22  ;;  %1732 = vmatprep.mubr.msk.f32.mxu1 %vm1987_vm1, %v1988_v13  ;;  %v1453_v22 = vld [vmem:[%s2396_s11 + $0x40] sm:$0xff] }
 0x4bd   : > { %1740 = vmatprep.subr.mxu1 %v1988_v13  ;;  %1831 = vmatpush3.bf16.msra.mxu0 %v1830_v21  ;;  %v1833_v24 = vpack.c.bf16 %v1454_v23, %v1453_v22 }
 0x4be   : > { %1832 = vmatprep.subr.bf16.mxu0 %v1986_v10 }
 0x4bf   : > { %1733 = vmatmul.mubr.msk.f32.vlgmr.msra.gmra.mrb[8].mxu1 %vm560_vm2, %v985_v25  ;;  %v1455_v25 = vld [vmem:[%s2396_s11 + $0x50] sm:$0xff] }
 0x4c0   : > { %v1917_v27 = vpop.eup %1916  ;;  %1741 = vmatpush3.msra.mxu1 %v1159_v26  ;;  %1742 = vmatprep.mubr.msk.f32.mxu1 %vm1987_vm1, %v1988_v13  ;;  %v1456_v26 = vld [vmem:[%s2396_s11 + $0x58] sm:$0xff] }
 0x4c1   : > { %v1157_v28 = vmul.f32 %v1917_v27, %v1909_v11  ;;  %1808 = vmatprep.subr.bf16.mxu1 %v1986_v10  ;;  %1834 = vmatpush3.bf16.msra.mxu0 %v1833_v24  ;;  %v1836_v27 = vpack.c.bf16 %v1456_v26, %v1455_v25 }
 0x4c2   : > { %1835 = vmatprep.subr.bf16.mxu0 %v1986_v10 }
 0x4c3   : > { %1743 = vmatmul.mubr.msk.f32.vlgmr.msra.gmra.mrb[10].mxu1 %vm560_vm2, %v1157_v28  ;;  %v1457_v28 = vld [vmem:[%s2396_s11 + $0x60] sm:$0xff] }
 0x4c4   : > { %1753 = vmatprep.mubr.msk.f32.mxu1 %vm1987_vm1, %v1988_v13  ;;  %1810 = vmatpush3.bf16.msra.mxu1 %v1809_v33  ;;  %v1842_v33 = vpack.c.bf16 %v1460_v32, %v1459_v31 }
 0x4c5   : > { %1811 = vmatprep.subr.bf16.mxu1 %v1986_v10  ;;  %1837 = vmatpush3.bf16.msra.mxu0 %v1836_v27 }
 0x4c6   : > { %1838 = vmatprep.subr.bf16.mxu0 %v1986_v10 }
 0x4c8   : > { %1813 = vmatpush3.bf16.msra.mxu1 %v1812_v36 }
 0x4c9   : > { %1814 = vmatprep.subr.bf16.mxu1 %v1986_v10 }
 0x585   : > { %v719_v29 = vpop.f32.mrb[4].mxu1 }
 0x586   : > { %723 = vst.msk [vmem:[#allocation2] sm:$0xff] %vm560_vm2, %v719_v29  ;;  %v1714_v30 = vpop.f32.mrb[5].mxu1  ;;  %v1458_v29 = vld [vmem:[%s2396_s11 + $0x68] sm:$0xff] }
 0x587   : > { %v1839_v30 = vpack.c.bf16 %v1458_v29, %v1457_v28 }
 0x589   : > { %1840 = vmatpush3.bf16.msra.mxu0 %v1839_v30 }
 0x58a   : > { %1841 = vmatprep.subr.bf16.mxu0 %v1986_v10 }
 0x58d   : > { %1843 = vmatpush3.bf16.msra.mxu0 %v1842_v33 }
 0x58e   : > { %v886_v37 = vpop.f32.mrb[6].mxu1 }
 0x58f   : > { %891 = vrot.lane.b32.xlu0 %v886_v37, %s2000_s15  ;;  %v1724_v38 = vpop.f32.mrb[7].mxu1 }
 0x592   : > { %v1058_v39 = vpop.f32.mrb[8].mxu1 }
 0x593   : > { %1063 = vrot.lane.b32.xlu1 %v1058_v39, %s2001_s16  ;;  %v1734_v40 = vpop.f32.mrb[9].mxu1 }
 0x596   : > { %v1230_v41 = vpop.f32.mrb[10].mxu1 }
 0x597   : > { %1235 = vrot.lane.b32.xlu0 %v1230_v41, %s2002_s20  ;;  %v1744_v42 = vpop.f32.mrb[11].mxu1  ;;  %s2342_s20 = scalar_lea.hbm %s2398_s13, %s1643_s0 }
 0x598   : > { %v1641_v42 = vld [vmem:[%s2397_s12] ss:$0 sm:$0xff] }
 0x601   : > { %v892_v43 = vpop.permute.xlu0 %891 }
 0x602   : > { %895 = vst.msk [vmem:[#allocation2] sm:$0xff] %vm894_vm4, %v892_v43 }
 0x605   : > { %v1064_v44 = vpop.permute.xlu1 %1063 }
 0x606   : > { %1067 = vst.msk [vmem:[#allocation2] sm:$0xff] %vm1066_vm5, %v1064_v44 }
 0x609   : > { %v1236_v45 = vpop.permute.xlu0 %1235 }
 0x60a   : > { %1239 = vst.msk [vmem:[#allocation2] sm:$0xff] %vm1238_vm6, %v1236_v45 }
 0x611   : > { %v1240_v46 = vld [vmem:[#allocation2] sm:$0xff] }
 0x612   : > { %1754 = vmatmul.mubr.msk.f32.vlgmr.msra.gmra.mrb[12].mxu1 %vm439_vm0, %v1240_v46 }
 0x613   : > { %1764 = vmatprep.mubr.msk.f32.mxu1 %vm1987_vm1, %v1988_v13 }
 0x6e5   : > { %v1314_v47 = vpop.f32.mrb[12].mxu1 }
 0x6e6   : > { %v1318_v49 = vadd.f32 %v1314_v47, %v2127_v0  ;;  %v1755_v50 = vpop.f32.mrb[13].mxu1  ;;  %v1357_v0 = vld [vmem:[%s2394_s9 + $0x8] sm:$0xff] }
 0x6e7   : > { %v1815_v58 = vpack.c.bf16 %v1357_v0, %v1356_v57 }
 0x6e8   : > { %v2249_v51 = vadd.f32 %v1636_v48, %v1318_v49 }
 0x6e9   : > { %1816 = vmatpush3.bf16.msra.mxu1 %v1815_v58 }
 0x6ea   : > { %v1329_v52 = vsel %vm439_vm0, %v2249_v51, 0.0  ;;  %1817 = vmatprep.subr.bf16.mxu1 %v1986_v10 }
 0x6eb   : > { %1330 = vadd.xlane.f32.xlu1 %v1329_v52 }
 0x6ed   : > { %1819 = vmatpush3.bf16.msra.mxu1 %v1818_v61 }
 0x778   : > { %v1331_v53 = vpop.xlane.xlu1 %1330 }
 0x779   : > { %v1332_v54 = vmul.f32 0.03125, %v1331_v53 }
 0x77b   : > { %v1333_v55 = vsub.f32 %v2249_v51, %v1332_v54 }
 0x77d   : > { %v1334_v56 = vmul.f32 %v1333_v55, %v1333_v55 }
 0x77f   : > { %v1335_v13 = vsel %vm439_vm0, %v1334_v56, 0.0 }
 0x780   : > { %1336 = vadd.xlane.f32.xlu0 %v1335_v13 }
 0x80d   : > { %v1337_v8 = vpop.xlane.xlu0 %1336 }
 0x80e   : > { %v1338_v9 = vmul.f32 0.03125, %v1337_v8 }
 0x810   : > { %v1339_v11 = vadd.f32 1e-05, %v1338_v9 }
 0x812   : > { %1918 = vrsqrt.f32 %v1339_v11 }
 0x81c   : > { %v1919_v12 = vpop.eup %1918 }
 0x81d   : > { %v1341_v15 = vmul.f32 %v1919_v12, %v1333_v55 }
 0x81f   : > { %v1348_v17 = vmul.f32 %v1637_v14, %v1341_v15 }
 0x821   : > { %v1355_v18 = vadd.f32 %v1638_v16, %v1348_v17 }
 0x823   : > { %1765 = vmatmul.mubr.msk.f32.vlgmr.msra.gmra.mrb[14].mxu1 %vm439_vm0, %v1355_v18 }
 0x8f6   : > { %v1436_v35 = vpop.f32.mrb[14].mxu1 }
 0x8f7   : > { %v1437_v36 = vadd.f32 %v1639_v34, %v1436_v35  ;;  %v1766_v37 = vpop.f32.mrb[15].mxu1 }
 0x8f9   : > { %v1441_v10 = vmul.f32 0.70710677, %v1437_v36  ;;  %v1440_v39 = vmul.f32 0.5, %v1437_v36 }
 0x8fb   : > { %1920 = verf.f32 %v1441_v10 }
 0x905   : > { %v1921_v38 = vpop.eup %1920 }
 0x906   : > { %v1443_v40 = vadd.f32 1.0, %v1921_v38 }
 0x908   : > { %v1444_v41 = vmul.f32 %v1443_v40, %v1440_v39 }
 0x90a   : > { %1800 = vmatmul.mubr.f32.vlgmr.msra.gmra.mrb[6].mxu0 %v1444_v41 }
 0x9dd   : > { %v1534_v43 = vpop.f32.mrb[6].mxu0 }
 0x9de   : > { %v1535_v44 = vadd.f32 %v1641_v42, %v1534_v43  ;;  %v1801_v45 = vpop.f32.mrb[7].mxu0 }
 0x9e0   : > { %v1538_v46 = vadd.f32 %v1535_v44, %v2249_v51 }
 0x9e2   : > { %1539 = vst.msk [vmem:[%s431_s1] sm:$0xff] %vm439_vm0, %v1538_v46 }
 0x9e3   : > { %1935 = shalt.err (!%p1932_p3)
}
 0x9e4   : > { %s1936_s21 = scalar_lea.hbm %s2342_s20, 128  ;;  %s1940_s15 = scalar_lea.hbm %s2398_s13, 256 }
 0x9e5   : > { %p1937_p4 = scmp.ne.s32.totalorder %s2342_s20, %s1936_s21  ;;  %p1941_p9 = scmp.lt.u32.totalorder %s2342_s20, %s2398_s13 }
 0x9e6   : > { %p1942_p10 = scmp.lt.u32.totalorder %s1940_s15, %s1936_s21  ;;  %p1944_p12 = scmp.lt.u32.totalorder %s1936_s21, %s2342_s20 }
 0x9e7   : > { %p1938_p7 = pnand %p1937_p4, %p2112_p5 }
 0x9e8   : > { %p1943_p11 = por %p1942_p10, %p1941_p9 }
 0x9e9   : > { %p1939_p8 = pneg %p1938_p7 }
 0x9ea   : > { %p1945_p13 = por %p1944_p12, %p1943_p11 }
 0x9ec   : > { %p1946_p0 = pnand %p1945_p13, %p1939_p8 }
 0x9ee   : > { %1949 = shalt.err (!%p1946_p0)
}
 0x9ef   : > { %1844 = dma.vmem_to_hbm [thread:$0]  (%p2112_p5), %s2344_s30, 128, %s2342_s20, %s1541_s23  }
 0x9f0 PF: > { %p1850_p1 = scmp.ge.s32.totalorder %s1984_s28, 2  ;;  %s1566_s2 = sand.u32 1, %s1972_s25  }
 0x9f1   : > { %s1567_s29 = scalar_lea.sflag [#allocation4], %s1566_s2 }
 0x9f2   : > { %p1847_p2 = pnand %p1850_p1, %p2116_p6 }
 0x9f4   : > { %1967 = dma.done.wait (!%p1847_p2), %s1567_s29, 128  }
 0x9f5   : > { %1969 = vsyncadd (!%p1847_p2), %s1567_s29, 4294967168  ;;  %p23_p3 = scmp.ge.s32.totalorder %s2099_s14, 4   ;;  %s2407_s25 = smov %s1976_s26 }
 0x9f6   : > { %s2408_s26 = smov %s1980_s27  ;;  %s2409_s27 = smov %s2110_s17 }
 0x9f7   : > { %s2410_s28 = smov %s2099_s14  ;;  %25 = sbr.rel (!%p23_p3) target bundleno = 7 (0x7), region = 107 }
 0x9fe   :  { %1572 = vsyncpa [#allocation4], 1 }
 0x9ff   :  { %1574 = vsyncpa [#allocation4 + $0x1], 1 }

</bundles_post_ra>
